<compile_context>
chip_gen: v7x
topology: tpu7x:2x2x1
jax: 0.10.0
libtpu: 0.0.40
codegen_flags: <defaults>
</compile_context>

<pallas_src>
import functools

import jax
import jax.numpy as jnp
from jax.experimental import pallas as pl
from jax.experimental.pallas import tpu as pltpu


def _round_up(x, m):
    return ((x + m - 1) // m) * m


def _vmem_capacity_bytes():
    """Physical VMEM per TensorCore, with a device-kind fallback."""
    try:
        return int(pltpu.get_tpu_info().vmem_capacity_bytes)
    except Exception:
        try:
            kind = jax.devices()[0].device_kind.lower()
        except Exception:
            kind = ""
        return (64 << 20) if "v7" in kind else (128 << 20)


def _fused_mlp_kernel(*refs, num_layers, compute_dtype):
    """Fused MLP on one batch tile.

    refs = (x_ref, w0, b0, w1, b1, ..., w_{L-1}, b_{L-1}, o_ref)
      x_ref: [TM, K]   w_l: [K_l, N_l_pad] (compute_dtype)   b_l: [1, N_l_pad] (f32)
      o_ref: [TM, N_out_pad] (f32)
    Intermediates stay in vregs/VMEM; matmuls accumulate in f32; bias+ReLU in f32.
    """
    x_ref = refs[0]
    o_ref = refs[-1]
    wb = refs[1:-1]

    h = x_ref[...].astype(jnp.float32)
    for l in range(num_layers):
        w = wb[2 * l][...]                # already in compute_dtype
        b = wb[2 * l + 1][...]            # [1, N] f32, broadcasts over rows
        h = jnp.dot(h.astype(compute_dtype), w, preferred_element_type=jnp.float32) + b
        if l < num_layers - 1:            # ReLU on hidden layers only
            h = jnp.maximum(h, 0.0)
    o_ref[...] = h.astype(o_ref.dtype)


def fused_mlp_forward(x, padded_params, output_size, *, compute_dtype=jnp.float32):
    """x: [M, K] f32 (unpadded). padded_params: list of (W [K_l, N_l_pad], b [1, N_l_pad])."""
    M, K = x.shape
    num_layers = len(padded_params)
    n_out_pad = padded_params[-1][0].shape[1]
    max_np = max(w.shape[1] for w, _ in padded_params)

    cap = _vmem_capacity_bytes()
    budget = int(0.80 * cap)

    weight_bytes = sum(int(w.size) * w.dtype.itemsize + int(b.size) * b.dtype.itemsize
                       for w, b in padded_params)

    def act_bytes(tm):
        # double-buffered x / out tiles + headroom for in-kernel f32 intermediates
        return 4 * (2 * tm * K + 2 * tm * n_out_pad + 2 * tm * max_np)

    # Batch tile: multiple of 8 sublanes, up to 512 rows, shrunk until the working set fits VMEM.
    tm = min(512, _round_up(M, 8))
    while tm > 8 and weight_bytes + act_bytes(tm) > budget:
        tm = max(8, _round_up(tm // 2, 8))

    if weight_bytes + act_bytes(tm) > budget:
        # TODO(synk): stream per-layer weight tiles (pltpu.emit_pipeline with memory_space=pl.ANY)
        # once resident weights no longer fit VMEM (matters on v7x's 64 MiB); exact XLA fallback now.
        h = x.astype(jnp.float32)
        for l, (w, b) in enumerate(padded_params):
            h = jnp.dot(h.astype(compute_dtype), w,
                        preferred_element_type=jnp.float32) + b.astype(jnp.float32)
            if l < num_layers - 1:
                h = jnp.maximum(h, 0.0)
        return h[:, :output_size]

    grid = (pl.cdiv(M, tm),)

    # Megacore: only CORE_PARALLEL actually splits grid steps across v7x's two TensorCores.
    try:
        kind = jax.devices()[0].device_kind.lower()
    except Exception:
        kind = ""
    if "v7" in kind and grid[0] >= 2 and grid[0] % 2 == 0:
        dim_sem = (pltpu.CORE_PARALLEL,)
    else:
        dim_sem = ("parallel",)

    kernel = functools.partial(_fused_mlp_kernel, num_layers=num_layers,
                               compute_dtype=compute_dtype)
    out_spec = pl.BlockSpec((tm, n_out_pad), lambda i: (i, 0))

    def run(single_buffer_weights):
        in_specs = [pl.BlockSpec((tm, K), lambda i: (i, 0))]
        flat_params = []
        for w, b in padded_params:
            if single_buffer_weights:
                in_specs.append(pl.BlockSpec(w.shape, lambda i: (0, 0),
                                             pipeline_mode=pl.Buffered(1)))
                in_specs.append(pl.BlockSpec(b.shape, lambda i: (0, 0),
                                             pipeline_mode=pl.Buffered(1)))
            else:
                in_specs.append(pl.BlockSpec(w.shape, lambda i: (0, 0)))
                in_specs.append(pl.BlockSpec(b.shape, lambda i: (0, 0)))
            flat_params.extend([w, b])

        wmult = 1 if single_buffer_weights else 2
        vmem_limit = int(min(cap, max(4 << 20, wmult * weight_bytes + act_bytes(tm) + (8 << 20))))

        return pl.pallas_call(
            kernel,
            out_shape=jax.ShapeDtypeStruct((M, n_out_pad), jnp.float32),
            grid_spec=pl.GridSpec(grid=grid, in_specs=in_specs, out_specs=out_spec),
            compiler_params=pltpu.CompilerParams(
                dimension_semantics=dim_sem,
                vmem_limit_bytes=vmem_limit,
            ),
        )(x, *flat_params)

    try:
        out_p = run(True)      # single-buffered (constant-index) weight/bias blocks
    except Exception:
        out_p = run(False)     # fallback: default double-buffered operands

    return out_p[:, :output_size]


class InverseNetworkPallas:
    """JAX/Pallas port of Tandem_network.Inverse_network_model.InverseNetwork."""

    def __init__(self, input_size, hidden_sizes, output_size, key,
                 compute_dtype=jnp.float32):
        sizes = [input_size] + list(hidden_sizes) + [output_size]
        self.input_size = input_size
        self.output_size = output_size
        self.compute_dtype = compute_dtype

        # nn.Linear-style init: U(-1/sqrt(fan_in), 1/sqrt(fan_in)); layout [in, out].
        self.params = []
        for i in range(len(sizes) - 1):
            fan_in, fan_out = sizes[i], sizes[i + 1]
            key, wk, bk = jax.random.split(key, 3)
            bound = float(1.0 / (fan_in ** 0.5))
            w = jax.random.uniform(wk, (fan_in, fan_out), jnp.float32, -bound, bound)
            b = jax.random.uniform(bk, (fan_out,), jnp.float32, -bound, bound)
            self.params.append((w, b))

        # One-time padding: only OUTPUT dims pad to 128 lanes (layer 0 keeps its contraction dim
        # unpadded so x needs no padded copy).  Exactness: padded columns get zero bias and feed
        # zero weight rows of the next layer; the true output is sliced out at the end.
        self.padded_params = []
        prev_in = input_size
        for (w, b) in self.params:
            fan_in, fan_out = w.shape
            out_pad = _round_up(fan_out, 128)
            wp = jnp.zeros((prev_in, out_pad), jnp.float32).at[:fan_in, :fan_out].set(w)
            bp = jnp.zeros((1, out_pad), jnp.float32).at[0, :fan_out].set(b)
            self.padded_params.append((wp.astype(compute_dtype), bp))
            prev_in = out_pad

    def __call__(self, x):
        return fused_mlp_forward(x, self.padded_params, self.output_size,
                                 compute_dtype=self.compute_dtype)


def _reference_forward(params, x):
    for w, b in params[:-1]:
        x = jnp.maximum(x @ w + b, 0.0)
    w, b = params[-1]
    return x @ w + b


if __name__ == "__main__":
    key = jax.random.PRNGKey(0)
    key, xkey, pkey = jax.random.split(key, 3)

    input_size = 16
    hidden_sizes = [32, 64]
    output_size = 8
    batch = 4

    x = jax.random.normal(xkey, (batch, input_size), jnp.float32)

    # Exact f32 path.
    model = InverseNetworkPallas(input_size, hidden_sizes, output_size, pkey)
    out = jax.block_until_ready(model(x))
    ref = _reference_forward(model.params, x)
    assert out.shape == (batch, output_size), out.shape
    assert jnp.allclose(out, ref, atol=1e-5, rtol=1e-5), "f32 mismatch vs JAX reference"

    # bf16-MXU path (same parameters; f32 accumulation) for v6e/v7x throughput.
    model_bf16 = InverseNetworkPallas(input_size, hidden_sizes, output_size, pkey,
                                      compute_dtype=jnp.bfloat16)
    out_bf16 = jax.block_until_ready(model_bf16(x))
    assert out_bf16.shape == (batch, output_size), out_bf16.shape
    assert jnp.allclose(out_bf16, ref, atol=1e-1, rtol=1e-1), "bf16 mismatch vs JAX reference"

    print("KERNEL_OK")
</pallas_src>

<mosaic_0001>
module attributes {stable_mosaic.version = 11 : i64} {
  func.func @_fused_mlp_kernel(%arg0: i32, %arg1: memref<8x16xf32, #tpu.memory_space<vmem>>, %arg2: memref<16x128xf32, #tpu.memory_space<vmem>>, %arg3: memref<1x128xf32, #tpu.memory_space<vmem>>, %arg4: memref<128x128xf32, #tpu.memory_space<vmem>>, %arg5: memref<1x128xf32, #tpu.memory_space<vmem>>, %arg6: memref<128x128xf32, #tpu.memory_space<vmem>>, %arg7: memref<1x128xf32, #tpu.memory_space<vmem>>, %arg8: memref<8x128xf32, #tpu.memory_space<vmem>>) attributes {dimension_semantics = [#tpu.dimension_semantics<parallel>], iteration_bounds = array<i64: 1>, scalar_prefetch = 0 : i64, scratch_operands = 0 : i64, tpu.core_type = #tpu.core_type<tc>, window_params = [{transform_indices = @transform_0, window_bounds = array<i64: 8, 16>}, {pipeline_mode = #tpu.pipeline_mode<synchronous>, transform_indices = @transform_1, window_bounds = array<i64: 16, 128>}, {pipeline_mode = #tpu.pipeline_mode<synchronous>, transform_indices = @transform_2, window_bounds = array<i64: 1, 128>}, {pipeline_mode = #tpu.pipeline_mode<synchronous>, transform_indices = @transform_3, window_bounds = array<i64: 128, 128>}, {pipeline_mode = #tpu.pipeline_mode<synchronous>, transform_indices = @transform_4, window_bounds = array<i64: 1, 128>}, {pipeline_mode = #tpu.pipeline_mode<synchronous>, transform_indices = @transform_5, window_bounds = array<i64: 128, 128>}, {pipeline_mode = #tpu.pipeline_mode<synchronous>, transform_indices = @transform_6, window_bounds = array<i64: 1, 128>}, {transform_indices = @transform_7, window_bounds = array<i64: 8, 128>}]} {
    %c0 = arith.constant 0 : index
    %c0_0 = arith.constant 0 : index
    %0 = vector.load %arg1[%c0, %c0_0] : memref<8x16xf32, #tpu.memory_space<vmem>>, vector<8x16xf32>
    %c0_1 = arith.constant 0 : index
    %c0_2 = arith.constant 0 : index
    %1 = vector.load %arg2[%c0_1, %c0_2] : memref<16x128xf32, #tpu.memory_space<vmem>>, vector<16x128xf32>
    %c0_3 = arith.constant 0 : index
    %c0_4 = arith.constant 0 : index
    %2 = vector.load %arg3[%c0_3, %c0_4] : memref<1x128xf32, #tpu.memory_space<vmem>>, vector<1x128xf32>
    %cst = arith.constant dense<0.000000e+00> : vector<8x128xf32>
    %3 = tpu.matmul %0, %1, %cst {dimension_numbers = #tpu.dot_dimension_numbers<[1], [0], [0], [1], [0, 0, 1, 1], [], []>} : vector<8x16xf32>, vector<16x128xf32>, vector<8x128xf32> -> vector<8x128xf32>
    %4 = vector.broadcast %2 : vector<1x128xf32> to vector<8x128xf32>
    %5 = arith.addf %3, %4 : vector<8x128xf32>
    %cst_5 = arith.constant 0.000000e+00 : f32
    %6 = vector.broadcast %cst_5 : f32 to vector<8x128xf32>
    %7 = arith.maximumf %5, %6 : vector<8x128xf32>
    %c0_6 = arith.constant 0 : index
    %c0_7 = arith.constant 0 : index
    %8 = vector.load %arg4[%c0_6, %c0_7] : memref<128x128xf32, #tpu.memory_space<vmem>>, vector<128x128xf32>
    %c0_8 = arith.constant 0 : index
    %c0_9 = arith.constant 0 : index
    %9 = vector.load %arg5[%c0_8, %c0_9] : memref<1x128xf32, #tpu.memory_space<vmem>>, vector<1x128xf32>
    %cst_10 = arith.constant dense<0.000000e+00> : vector<8x128xf32>
    %10 = tpu.matmul %7, %8, %cst_10 {dimension_numbers = #tpu.dot_dimension_numbers<[1], [0], [0], [1], [0, 0, 1, 1], [], []>} : vector<8x128xf32>, vector<128x128xf32>, vector<8x128xf32> -> vector<8x128xf32>
    %11 = vector.broadcast %9 : vector<1x128xf32> to vector<8x128xf32>
    %12 = arith.addf %10, %11 : vector<8x128xf32>
    %cst_11 = arith.constant 0.000000e+00 : f32
    %13 = vector.broadcast %cst_11 : f32 to vector<8x128xf32>
    %14 = arith.maximumf %12, %13 : vector<8x128xf32>
    %c0_12 = arith.constant 0 : index
    %c0_13 = arith.constant 0 : index
    %15 = vector.load %arg6[%c0_12, %c0_13] : memref<128x128xf32, #tpu.memory_space<vmem>>, vector<128x128xf32>
    %c0_14 = arith.constant 0 : index
    %c0_15 = arith.constant 0 : index
    %16 = vector.load %arg7[%c0_14, %c0_15] : memref<1x128xf32, #tpu.memory_space<vmem>>, vector<1x128xf32>
    %cst_16 = arith.constant dense<0.000000e+00> : vector<8x128xf32>
    %17 = tpu.matmul %14, %15, %cst_16 {dimension_numbers = #tpu.dot_dimension_numbers<[1], [0], [0], [1], [0, 0, 1, 1], [], []>} : vector<8x128xf32>, vector<128x128xf32>, vector<8x128xf32> -> vector<8x128xf32>
    %18 = vector.broadcast %16 : vector<1x128xf32> to vector<8x128xf32>
    %19 = arith.addf %17, %18 : vector<8x128xf32>
    %c0_17 = arith.constant 0 : index
    %c0_18 = arith.constant 0 : index
    %20 = vector.load %arg8[%c0_17, %c0_18] : memref<8x128xf32, #tpu.memory_space<vmem>>, vector<8x128xf32>
    tpu.vector_store %arg8[%c0_17, %c0_18], %19 {strides = array<i32>} : memref<8x128xf32, #tpu.memory_space<vmem>>, vector<8x128xf32>,
    return
  }
  func.func @transform_0(%arg0: i32) -> (i32, i32) {
    %c0_i32 = arith.constant 0 : i32
    %c0_i32_0 = arith.constant 0 : i32
    return %arg0, %c0_i32 : i32, i32
  }
  func.func @transform_1(%arg0: i32) -> (i32, i32) {
    %c0_i32 = arith.constant 0 : i32
    %c0_i32_0 = arith.constant 0 : i32
    %c0_i32_1 = arith.constant 0 : i32
    return %c0_i32, %c0_i32_0 : i32, i32
  }
  func.func @transform_2(%arg0: i32) -> (i32, i32) {
    %c0_i32 = arith.constant 0 : i32
    %c0_i32_0 = arith.constant 0 : i32
    %c0_i32_1 = arith.constant 0 : i32
    return %c0_i32, %c0_i32_0 : i32, i32
  }
  func.func @transform_3(%arg0: i32) -> (i32, i32) {
    %c0_i32 = arith.constant 0 : i32
    %c0_i32_0 = arith.constant 0 : i32
    %c0_i32_1 = arith.constant 0 : i32
    return %c0_i32, %c0_i32_0 : i32, i32
  }
  func.func @transform_4(%arg0: i32) -> (i32, i32) {
    %c0_i32 = arith.constant 0 : i32
    %c0_i32_0 = arith.constant 0 : i32
    %c0_i32_1 = arith.constant 0 : i32
    return %c0_i32, %c0_i32_0 : i32, i32
  }
  func.func @transform_5(%arg0: i32) -> (i32, i32) {
    %c0_i32 = arith.constant 0 : i32
    %c0_i32_0 = arith.constant 0 : i32
    %c0_i32_1 = arith.constant 0 : i32
    return %c0_i32, %c0_i32_0 : i32, i32
  }
  func.func @transform_6(%arg0: i32) -> (i32, i32) {
    %c0_i32 = arith.constant 0 : i32
    %c0_i32_0 = arith.constant 0 : i32
    %c0_i32_1 = arith.constant 0 : i32
    return %c0_i32, %c0_i32_0 : i32, i32
  }
  func.func @transform_7(%arg0: i32) -> (i32, i32) {
    %c0_i32 = arith.constant 0 : i32
    %c0_i32_0 = arith.constant 0 : i32
    return %arg0, %c0_i32 : i32, i32
  }
}

module attributes {stable_mosaic.version = 11 : i64} {
  func.func @_fused_mlp_kernel(%arg0: i32, %arg1: memref<8x16xf32, #tpu.memory_space<vmem>>, %arg2: memref<16x128xf32, #tpu.memory_space<vmem>>, %arg3: memref<1x128xf32, #tpu.memory_space<vmem>>, %arg4: memref<128x128xf32, #tpu.memory_space<vmem>>, %arg5: memref<1x128xf32, #tpu.memory_space<vmem>>, %arg6: memref<128x128xf32, #tpu.memory_space<vmem>>, %arg7: memref<1x128xf32, #tpu.memory_space<vmem>>, %arg8: memref<8x128xf32, #tpu.memory_space<vmem>>) attributes {dimension_semantics = [#tpu.dimension_semantics<parallel>], iteration_bounds = array<i64: 1>, scalar_prefetch = 0 : i64, scratch_operands = 0 : i64, tpu.core_type = #tpu.core_type<tc>, window_params = [{transform_indices = @transform_0, window_bounds = array<i64: 8, 16>}, {pipeline_mode = #tpu.pipeline_mode<synchronous>, transform_indices = @transform_1, window_bounds = array<i64: 16, 128>}, {pipeline_mode = #tpu.pipeline_mode<synchronous>, transform_indices = @transform_2, window_bounds = array<i64: 1, 128>}, {pipeline_mode = #tpu.pipeline_mode<synchronous>, transform_indices = @transform_3, window_bounds = array<i64: 128, 128>}, {pipeline_mode = #tpu.pipeline_mode<synchronous>, transform_indices = @transform_4, window_bounds = array<i64: 1, 128>}, {pipeline_mode = #tpu.pipeline_mode<synchronous>, transform_indices = @transform_5, window_bounds = array<i64: 128, 128>}, {pipeline_mode = #tpu.pipeline_mode<synchronous>, transform_indices = @transform_6, window_bounds = array<i64: 1, 128>}, {transform_indices = @transform_7, window_bounds = array<i64: 8, 128>}]} {
    %c0 = arith.constant 0 : index
    %c0_0 = arith.constant 0 : index
    %0 = vector.load %arg1[%c0, %c0_0] : memref<8x16xf32, #tpu.memory_space<vmem>>, vector<8x16xf32>
    %c0_1 = arith.constant 0 : index
    %c0_2 = arith.constant 0 : index
    %1 = vector.load %arg2[%c0_1, %c0_2] : memref<16x128xf32, #tpu.memory_space<vmem>>, vector<16x128xf32>
    %c0_3 = arith.constant 0 : index
    %c0_4 = arith.constant 0 : index
    %2 = vector.load %arg3[%c0_3, %c0_4] : memref<1x128xf32, #tpu.memory_space<vmem>>, vector<1x128xf32>
    %cst = arith.constant dense<0.000000e+00> : vector<8x128xf32>
    %3 = tpu.matmul %0, %1, %cst {dimension_numbers = #tpu.dot_dimension_numbers<[1], [0], [0], [1], [0, 0, 1, 1], [], []>} : vector<8x16xf32>, vector<16x128xf32>, vector<8x128xf32> -> vector<8x128xf32>
    %4 = vector.broadcast %2 : vector<1x128xf32> to vector<8x128xf32>
    %5 = arith.addf %3, %4 : vector<8x128xf32>
    %cst_5 = arith.constant 0.000000e+00 : f32
    %6 = vector.broadcast %cst_5 : f32 to vector<8x128xf32>
    %7 = arith.maximumf %5, %6 : vector<8x128xf32>
    %c0_6 = arith.constant 0 : index
    %c0_7 = arith.constant 0 : index
    %8 = vector.load %arg4[%c0_6, %c0_7] : memref<128x128xf32, #tpu.memory_space<vmem>>, vector<128x128xf32>
    %c0_8 = arith.constant 0 : index
    %c0_9 = arith.constant 0 : index
    %9 = vector.load %arg5[%c0_8, %c0_9] : memref<1x128xf32, #tpu.memory_space<vmem>>, vector<1x128xf32>
    %cst_10 = arith.constant dense<0.000000e+00> : vector<8x128xf32>
    %10 = tpu.matmul %7, %8, %cst_10 {dimension_numbers = #tpu.dot_dimension_numbers<[1], [0], [0], [1], [0, 0, 1, 1], [], []>} : vector<8x128xf32>, vector<128x128xf32>, vector<8x128xf32> -> vector<8x128xf32>
    %11 = vector.broadcast %9 : vector<1x128xf32> to vector<8x128xf32>
    %12 = arith.addf %10, %11 : vector<8x128xf32>
    %cst_11 = arith.constant 0.000000e+00 : f32
    %13 = vector.broadcast %cst_11 : f32 to vector<8x128xf32>
    %14 = arith.maximumf %12, %13 : vector<8x128xf32>
    %c0_12 = arith.constant 0 : index
    %c0_13 = arith.constant 0 : index
    %15 = vector.load %arg6[%c0_12, %c0_13] : memref<128x128xf32, #tpu.memory_space<vmem>>, vector<128x128xf32>
    %c0_14 = arith.constant 0 : index
    %c0_15 = arith.constant 0 : index
    %16 = vector.load %arg7[%c0_14, %c0_15] : memref<1x128xf32, #tpu.memory_space<vmem>>, vector<1x128xf32>
    %cst_16 = arith.constant dense<0.000000e+00> : vector<8x128xf32>
    %17 = tpu.matmul %14, %15, %cst_16 {dimension_numbers = #tpu.dot_dimension_numbers<[1], [0], [0], [1], [0, 0, 1, 1], [], []>} : vector<8x128xf32>, vector<128x128xf32>, vector<8x128xf32> -> vector<8x128xf32>
    %18 = vector.broadcast %16 : vector<1x128xf32> to vector<8x128xf32>
    %19 = arith.addf %17, %18 : vector<8x128xf32>
    %c0_17 = arith.constant 0 : index
    %c0_18 = arith.constant 0 : index
    %20 = vector.load %arg8[%c0_17, %c0_18] : memref<8x128xf32, #tpu.memory_space<vmem>>, vector<8x128xf32>
    tpu.vector_store %arg8[%c0_17, %c0_18], %19 {strides = array<i32>} : memref<8x128xf32, #tpu.memory_space<vmem>>, vector<8x128xf32>,
    return
  }
  func.func @transform_0(%arg0: i32) -> (i32, i32) {
    %c0_i32 = arith.constant 0 : i32
    %c0_i32_0 = arith.constant 0 : i32
    return %arg0, %c0_i32 : i32, i32
  }
  func.func @transform_1(%arg0: i32) -> (i32, i32) {
    %c0_i32 = arith.constant 0 : i32
    %c0_i32_0 = arith.constant 0 : i32
    %c0_i32_1 = arith.constant 0 : i32
    return %c0_i32, %c0_i32_0 : i32, i32
  }
  func.func @transform_2(%arg0: i32) -> (i32, i32) {
    %c0_i32 = arith.constant 0 : i32
    %c0_i32_0 = arith.constant 0 : i32
    %c0_i32_1 = arith.constant 0 : i32
    return %c0_i32, %c0_i32_0 : i32, i32
  }
  func.func @transform_3(%arg0: i32) -> (i32, i32) {
    %c0_i32 = arith.constant 0 : i32
    %c0_i32_0 = arith.constant 0 : i32
    %c0_i32_1 = arith.constant 0 : i32
    return %c0_i32, %c0_i32_0 : i32, i32
  }
  func.func @transform_4(%arg0: i32) -> (i32, i32) {
    %c0_i32 = arith.constant 0 : i32
    %c0_i32_0 = arith.constant 0 : i32
    %c0_i32_1 = arith.constant 0 : i32
    return %c0_i32, %c0_i32_0 : i32, i32
  }
  func.func @transform_5(%arg0: i32) -> (i32, i32) {
    %c0_i32 = arith.constant 0 : i32
    %c0_i32_0 = arith.constant 0 : i32
    %c0_i32_1 = arith.constant 0 : i32
    return %c0_i32, %c0_i32_0 : i32, i32
  }
  func.func @transform_6(%arg0: i32) -> (i32, i32) {
    %c0_i32 = arith.constant 0 : i32
    %c0_i32_0 = arith.constant 0 : i32
    %c0_i32_1 = arith.constant 0 : i32
    return %c0_i32, %c0_i32_0 : i32, i32
  }
  func.func @transform_7(%arg0: i32) -> (i32, i32) {
    %c0_i32 = arith.constant 0 : i32
    %c0_i32_0 = arith.constant 0 : i32
    return %arg0, %c0_i32 : i32, i32
  }
}

</mosaic_0001>

<bundles_post_ra>
// kernel: tpu_custom_call.1
= control target key start
LH: loop header
LB: loop body
LE: loop exit
PB: predicated region body
PF: predicated region fallthrough
CT: control target
= control target key end

     0   :  { %12 = vsyncpa [#allocation3], 0  ;;  %s836_s0 = inlined_call_operand.hbm [shape: f32[4,16], index: 0, kind: input, shape index: {}]   ;;  %s837_s1 = inlined_call_operand.hbm [shape: f32[16,128], index: 1, kind: input, shape index: {}]   ;;  %s838_s2 = inlined_call_operand.vmem [shape: f32[1,128], index: 2, kind: input, shape index: {}]   ;;  %s839_s3 = inlined_call_operand.hbm [shape: f32[128,128], index: 3, kind: input, shape index: {}]   ;;  %s840_s4 = inlined_call_operand.vmem [shape: f32[1,128], index: 4, kind: input, shape index: {}]   ;;  %s841_s5 = inlined_call_operand.hbm [shape: f32[128,128], index: 5, kind: input, shape index: {}]   ;;  %s842_s6 = inlined_call_operand.vmem [shape: f32[1,128], index: 6, kind: input, shape index: {}]   ;;  %s843_s7 = inlined_call_operand.hbm [shape: f32[4,128], index: 7, kind: output, shape index: {}]  }
   0x1   :  { %13 = vsyncpa [#allocation6], 0 }
   0x2   :  { %14 = vsyncpa [#allocation9], 0 }
   0x3   :  { %15 = vsyncpa [#allocation4], 0 }
   0x4   :  { %20 = vsyncadd [#allocation3], 64  ;;  %s673_s24 = smov [#allocation5]   ;;  %s555_s28 = scalar_lea.hbm %s837_s1, 256 }
   0x5   :  { %s33_s25 = sshll.u32 %s673_s24, 4  ;;  %p556_p0 = scmp.ne.s32.totalorder %s837_s1, %s555_s28  ;;  %s34_s25 = int_to_ptr.vmem [resolvable:$true] %s33_s25 }
   0x6   :  { %p559_p1 = scmp.lt.u32.totalorder %s555_s28, %s837_s1 }
   0x8   :  { %p561_p2 = pnand %p559_p1, %p556_p0 }
   0xa   :  { %564 = shalt.err (!%p561_p2)
}
   0xb   :  { %s565_s10 = scalar_lea.vmem %s34_s25, 256  ;;  %p570_p4 = scmp.lt.s32.totalorder %s34_s25, %s34_s25 }
   0xc   :  { %p566_p3 = scmp.ne.s32.totalorder %s34_s25, %s565_s10  ;;  %p571_p5 = scmp.lt.s32.totalorder %s565_s10, %s565_s10 }
   0xe   :  { %p572_p6 = por %p571_p5, %p570_p4 }
  0x10   :  { %p573_p7 = pnand %p572_p6, %p566_p3 }
  0x12   :  { %576 = shalt.err (!%p573_p7)
}
  0x13   :  { %s674_s11 = smov 128   ;;  %s675_s12 = smov 8  }
  0x14   :  { %39 = dma.hbm_to_vmem [thread:$0]  %s837_s1, 256, %s34_s25, [#allocation6], %s674_s11, %s674_s11, %s675_s12  }
  0x15   :  { %s676_s15 = smov [#allocation2]   ;;  %s577_s19 = scalar_lea.hbm %s836_s0, 64 }
  0x16   :  { %s21_s16 = sshll.u32 %s676_s15, 4  ;;  %p578_p8 = scmp.ne.s32.totalorder %s836_s0, %s577_s19  ;;  %s22_s16 = int_to_ptr.vmem [resolvable:$true] %s21_s16 }
  0x17   :  { %p581_p9 = scmp.lt.u32.totalorder %s577_s19, %s836_s0 }
  0x19   :  { %p583_p10 = pnand %p581_p9, %p578_p8 }
  0x1b   :  { %586 = shalt.err (!%p583_p10)
}
  0x1c   :  { %s587_s24 = scalar_lea.vmem %s22_s16, 64  ;;  %s591_s1 = scalar_lea.vmem %s22_s16, 128 }
  0x1d   :  { %p588_p11 = scmp.ne.s32.totalorder %s22_s16, %s587_s24  ;;  %p592_p12 = scmp.lt.s32.totalorder %s22_s16, %s22_s16 }
  0x1e   :  { %p593_p13 = scmp.lt.s32.totalorder %s591_s1, %s587_s24 }
  0x20   :  { %p594_p0 = por %p593_p13, %p592_p12 }
  0x22   :  { %p595_p1 = pnand %p594_p0, %p588_p11 }
  0x24   :  { %598 = shalt.err (!%p595_p1)
}
  0x25   :  { %s677_s25 = smov 64   ;;  %s678_s26 = smov 4  }
  0x26   :  { %27 = dma.hbm_to_vmem [thread:$0]  %s836_s0, 64, %s22_s16, [#allocation3], %s677_s25, %s677_s25, %s678_s26  }
  0x27   :  { %s679_s29 = smov [#allocation7]   ;;  %s680_s8 = smov [#allocation8]  }
  0x28   :  { %s47_s30 = sshll.u32 %s679_s29, 4  ;;  %s61_s9 = sshll.u32 %s680_s8, 4  ;;  %s48_s30 = int_to_ptr.vmem [resolvable:$true] %s47_s30  ;;  %s755_s9 = int_to_ptr.vmem [resolvable:$true] %s61_s9 }
  0x29   :  { %s599_s14 = scalar_lea.hbm %s839_s3, 2048 }
  0x2a   :  { %p600_p2 = scmp.ne.s32.totalorder %s839_s3, %s599_s14  ;;  %p603_p3 = scmp.lt.u32.totalorder %s599_s14, %s839_s3 }
  0x2c   :  { %p605_p4 = pnand %p603_p3, %p600_p2 }
  0x2e   :  { %608 = shalt.err (!%p605_p4)
}
  0x2f   :  { %s609_s0 = scalar_lea.vmem %s48_s30, 2048  ;;  %p614_p6 = scmp.lt.s32.totalorder %s48_s30, %s48_s30 }
  0x30   :  { %p610_p5 = scmp.ne.s32.totalorder %s48_s30, %s609_s0  ;;  %p615_p7 = scmp.lt.s32.totalorder %s609_s0, %s609_s0 }
  0x32   :  { %p616_p8 = por %p615_p7, %p614_p6 }
  0x34   :  { %p617_p9 = pnand %p616_p8, %p610_p5 }
  0x36   :  { %620 = shalt.err (!%p617_p9)
}
  0x37   :  { %53 = dma.hbm_to_vmem [thread:$0]  %s839_s3, 2048, %s48_s30, [#allocation6], %s674_s11, %s674_s11, %s675_s12  }
  0x38   :  { %s621_s23 = scalar_lea.hbm %s841_s5, 2048 }
  0x39   :  { %p622_p10 = scmp.ne.s32.totalorder %s841_s5, %s621_s23  ;;  %p625_p11 = scmp.lt.u32.totalorder %s621_s23, %s841_s5 }
  0x3b   :  { %p627_p12 = pnand %p625_p11, %p622_p10 }
  0x3d   :  { %630 = shalt.err (!%p627_p12)
}
  0x3e   :  { %s631_s29 = scalar_lea.vmem %s755_s9, 2048  ;;  %p636_p0 = scmp.lt.s32.totalorder %s755_s9, %s755_s9 }
  0x3f   :  { %p632_p13 = scmp.ne.s32.totalorder %s755_s9, %s631_s29  ;;  %p637_p1 = scmp.lt.s32.totalorder %s631_s29, %s631_s29 }
  0x41   :  { %p638_p2 = por %p637_p1, %p636_p0 }
  0x43   :  { %p639_p3 = pnand %p638_p2, %p632_p13 }
  0x45   :  { %642 = shalt.err (!%p639_p3)
}
  0x46   :  { %67 = dma.hbm_to_vmem [thread:$0]  %s841_s5, 2048, %s755_s9, [#allocation9], %s674_s11, %s674_s11, %s675_s12  }
  0x47   :  { %665 = dma.done.wait [#allocation3], 128  }
  0x48   :  { %666 = vsyncadd [#allocation3], 4294967168 }
  0x49   :  { %667 = dma.done.wait [#allocation6], 2304  }
  0x4a   :  { %668 = vsyncadd [#allocation6], 4294964992 }
  0x4b   :  { %669 = dma.done.wait [#allocation9], 2048  }
  0x4c   :  { %670 = vsyncadd [#allocation9], 4294965248  ;;  %v681_v0 = vmov 0.0|0.0   ;;  %vm682_vm0 = vmmov 0   ;;  %v683_v1 = vmov 0.0   ;;  %v83_v2 = vld [vmem:[#allocation5] sm:$0xff] }
  0x4d   :  { %492 = vmatprep.subr.bf16.mxu0 %v681_v0  ;;  %419 = vmatprep.mubr.msk.f32.mxu0 %vm682_vm0, %v683_v1  ;;  %v84_v3 = vld [vmem:[#allocation5 + $0x8] sm:$0xff]  ;;  %v167_v5 = vld [vmem:[#allocation7] sm:$0xff]  ;;  %v168_v6 = vld [vmem:[#allocation7 + $0x8] sm:$0xff]  ;;  %vm92_vm1 = vcmask 130048  }
  0x4e   :  { %495 = vmatprep.subr.bf16.mxu1 %v681_v0  ;;  %454 = vmatprep.mubr.msk.f32.mxu1 %vm682_vm0, %v683_v1  ;;  %v493_v4 = vpack.c.bf16 %v84_v3, %v83_v2  ;;  %v169_v7 = vld [vmem:[#allocation7 + $0x10] sm:$0xff]  ;;  %v496_v8 = vpack.c.bf16 %v168_v6, %v167_v5  ;;  %v170_v9 = vld [vmem:[#allocation7 + $0x18] sm:$0xff]  ;;  %v82_v10 = vld [vmem:[#allocation2] sm:$0xff] }
  0x4f   :  { %v499_v11 = vpack.c.bf16 %v170_v9, %v169_v7  ;;  %v171_v12 = vld [vmem:[#allocation7 + $0x20] sm:$0xff]  ;;  %v172_v13 = vld [vmem:[#allocation7 + $0x28] sm:$0xff]  ;;  %v173_v15 = vld [vmem:[#allocation7 + $0x30] sm:$0xff] }
  0x50   :  { %494 = vmatpush3.bf16.msra.mxu0 %v493_v4  ;;  %497 = vmatpush3.bf16.msra.mxu1 %v496_v8  ;;  %v502_v14 = vpack.c.bf16 %v172_v13, %v171_v12  ;;  %v174_v16 = vld [vmem:[#allocation7 + $0x38] sm:$0xff]  ;;  %v175_v18 = vld [vmem:[#allocation7 + $0x40] sm:$0xff]  ;;  %v176_v19 = vld [vmem:[#allocation7 + $0x48] sm:$0xff] }
  0x51   :  { %519 = vmatprep.subr.bf16.mxu0 %v681_v0  ;;  %498 = vmatprep.subr.bf16.mxu1 %v681_v0  ;;  %v505_v17 = vpack.c.bf16 %v174_v16, %v173_v15  ;;  %v508_v20 = vpack.c.bf16 %v176_v19, %v175_v18  ;;  %v177_v21 = vld [vmem:[#allocation7 + $0x50] sm:$0xff]  ;;  %v178_v22 = vld [vmem:[#allocation7 + $0x58] sm:$0xff]  ;;  %v179_v24 = vld [vmem:[#allocation7 + $0x60] sm:$0xff] }
  0x52   :  { %v511_v23 = vpack.c.bf16 %v178_v22, %v177_v21  ;;  %v180_v25 = vld [vmem:[#allocation7 + $0x68] sm:$0xff]  ;;  %v181_v27 = vld [vmem:[#allocation7 + $0x70] sm:$0xff]  ;;  %v182_v28 = vld [vmem:[#allocation7 + $0x78] sm:$0xff] }
  0x53   :  { %420 = vmatmul.mubr.msk.f32.vlgmr.msra.gmra.mrb[0].mxu0 %vm92_vm1, %v82_v10  ;;  %v514_v26 = vpack.c.bf16 %v180_v25, %v179_v24  ;;  %v517_v29 = vpack.c.bf16 %v182_v28, %v181_v27  ;;  %v261_v30 = vld [vmem:[#allocation8] sm:$0xff]  ;;  %v262_v31 = vld [vmem:[#allocation8 + $0x8] sm:$0xff]  ;;  %v263_v32 = vld [vmem:[#allocation8 + $0x10] sm:$0xff] }
  0x54   :  { %489 = vmatprep.mubr.msk.f32.mxu0 %vm682_vm0, %v683_v1  ;;  %500 = vmatpush3.bf16.msra.mxu1 %v499_v11  ;;  %v520_v33 = vpack.c.bf16 %v262_v31, %v261_v30  ;;  %v264_v34 = vld [vmem:[#allocation8 + $0x18] sm:$0xff]  ;;  %v265_v36 = vld [vmem:[#allocation8 + $0x20] sm:$0xff]  ;;  %v266_v37 = vld [vmem:[#allocation8 + $0x28] sm:$0xff] }
  0x55   :  { %501 = vmatprep.subr.bf16.mxu1 %v681_v0  ;;  %v523_v35 = vpack.c.bf16 %v264_v34, %v263_v32  ;;  %v526_v38 = vpack.c.bf16 %v266_v37, %v265_v36  ;;  %v267_v39 = vld [vmem:[#allocation8 + $0x30] sm:$0xff]  ;;  %v268_v40 = vld [vmem:[#allocation8 + $0x38] sm:$0xff]  ;;  %v269_v42 = vld [vmem:[#allocation8 + $0x40] sm:$0xff] }
  0x56   :  { %521 = vmatpush3.bf16.msra.mxu0 %v520_v33  ;;  %v529_v41 = vpack.c.bf16 %v268_v40, %v267_v39  ;;  %v270_v43 = vld [vmem:[#allocation8 + $0x48] sm:$0xff]  ;;  %v271_v45 = vld [vmem:[#allocation8 + $0x50] sm:$0xff]  ;;  %v272_v46 = vld [vmem:[#allocation8 + $0x58] sm:$0xff] }
  0x57   :  { %522 = vmatprep.subr.bf16.mxu0 %v681_v0  ;;  %v532_v44 = vpack.c.bf16 %v270_v43, %v269_v42  ;;  %v535_v47 = vpack.c.bf16 %v272_v46, %v271_v45  ;;  %v273_v48 = vld [vmem:[#allocation8 + $0x60] sm:$0xff]  ;;  %v274_v49 = vld [vmem:[#allocation8 + $0x68] sm:$0xff]  ;;  %v275_v56 = vld [vmem:[#allocation8 + $0x70] sm:$0xff] }
  0x58   :  { %503 = vmatpush3.bf16.msra.mxu1 %v502_v14  ;;  %v538_v50 = vpack.c.bf16 %v274_v49, %v273_v48  ;;  %v374_v51 = vld [vmem:[%s838_s2] ss:$0 sm:$0xff]  ;;  %v276_v57 = vld [vmem:[#allocation8 + $0x78] sm:$0xff] }
  0x59   :  { %504 = vmatprep.subr.bf16.mxu1 %v681_v0  ;;  %v541_v58 = vpack.c.bf16 %v276_v57, %v275_v56  ;;  %v376_v59 = vld [vmem:[%s840_s4] ss:$0 sm:$0xff] }
  0x5a   :  { %524 = vmatpush3.bf16.msra.mxu0 %v523_v35 }
  0x5b   :  { %525 = vmatprep.subr.bf16.mxu0 %v681_v0 }
  0x5c   :  { %506 = vmatpush3.bf16.msra.mxu1 %v505_v17 }
  0x5d   :  { %507 = vmatprep.subr.bf16.mxu1 %v681_v0 }
  0x5e   :  { %527 = vmatpush3.bf16.msra.mxu0 %v526_v38 }
  0x5f   :  { %528 = vmatprep.subr.bf16.mxu0 %v681_v0 }
  0x60   :  { %509 = vmatpush3.bf16.msra.mxu1 %v508_v20 }
  0x61   :  { %510 = vmatprep.subr.bf16.mxu1 %v681_v0 }
  0x62   :  { %530 = vmatpush3.bf16.msra.mxu0 %v529_v41 }
  0x63   :  { %531 = vmatprep.subr.bf16.mxu0 %v681_v0 }
  0x64   :  { %512 = vmatpush3.bf16.msra.mxu1 %v511_v23 }
  0x65   :  { %513 = vmatprep.subr.bf16.mxu1 %v681_v0 }
  0x66   :  { %533 = vmatpush3.bf16.msra.mxu0 %v532_v44 }
  0x67   :  { %534 = vmatprep.subr.bf16.mxu0 %v681_v0 }
  0x68   :  { %515 = vmatpush3.bf16.msra.mxu1 %v514_v26 }
  0x69   :  { %516 = vmatprep.subr.bf16.mxu1 %v681_v0 }
  0x6a   :  { %536 = vmatpush3.bf16.msra.mxu0 %v535_v47 }
  0x6b   :  { %537 = vmatprep.subr.bf16.mxu0 %v681_v0 }
  0x6c   :  { %518 = vmatpush3.bf16.msra.mxu1 %v517_v29 }
  0x6e   :  { %539 = vmatpush3.bf16.msra.mxu0 %v538_v50 }
  0x6f   :  { %540 = vmatprep.subr.bf16.mxu0 %v681_v0  ;;  %v377_v0 = vld [vmem:[%s842_s6] ss:$0 sm:$0xff] }
  0x72   :  { %542 = vmatpush3.bf16.msra.mxu0 %v541_v58 }
 0x126   :  { %v162_v52 = vpop.f32.mrb[0].mxu0 }
 0x127   :  { %v163_v53 = vadd.f32 %v374_v51, %v162_v52  ;;  %v421_v54 = vpop.f32.mrb[1].mxu0 }
 0x129   :  { %v166_v55 = vmax.f32 %v163_v53, 0.0 }
 0x12b   :  { %455 = vmatmul.mubr.f32.vlgmr.msra.gmra.mrb[0].mxu1 %v166_v55 }
 0x1fe   :  { %v256_v60 = vpop.f32.mrb[0].mxu1 }
 0x1ff   :  { %v257_v61 = vadd.f32 %v376_v59, %v256_v60  ;;  %v456_v62 = vpop.f32.mrb[1].mxu1 }
 0x201   :  { %v260_v63 = vmax.f32 %v257_v61, 0.0 }
 0x203   :  { %490 = vmatmul.mubr.f32.vlgmr.msra.gmra.mrb[2].mxu0 %v260_v63 }
 0x2d6   :  { %v350_v1 = vpop.f32.mrb[2].mxu0 }
 0x2d7   :  { %v351_v2 = vadd.f32 %v377_v0, %v350_v1  ;;  %v491_v3 = vpop.f32.mrb[3].mxu0 }
 0x2d9   :  { %354 = vst [vmem:[#allocation10] sm:$0xff] %v351_v2 }
 0x2da   :  { %359 = vsyncadd [#allocation4], 64  ;;  %s684_s10 = smov [#allocation10]  }
 0x2db   :  { %s360_s13 = sshll.u32 %s684_s10, 4  ;;  %s361_s13 = int_to_ptr.vmem [resolvable:$true] %s360_s13 }
 0x2dc   :  { %s643_s14 = scalar_lea.vmem %s361_s13, 64  ;;  %s647_s4 = scalar_lea.vmem %s361_s13, 128 }
 0x2dd   :  { %p644_p4 = scmp.ne.s32.totalorder %s361_s13, %s643_s14  ;;  %p648_p5 = scmp.lt.s32.totalorder %s361_s13, %s361_s13 }
 0x2de   :  { %p649_p6 = scmp.lt.s32.totalorder %s647_s4, %s643_s14 }
 0x2e0   :  { %p650_p7 = por %p649_p6, %p648_p5 }
 0x2e2   :  { %p651_p8 = pnand %p650_p7, %p644_p4 }
 0x2e4   :  { %654 = shalt.err (!%p651_p8)
}
 0x2e5   :  { %s655_s6 = scalar_lea.hbm %s843_s7, 64 }
 0x2e6   :  { %p656_p9 = scmp.ne.s32.totalorder %s843_s7, %s655_s6  ;;  %p659_p10 = scmp.lt.u32.totalorder %s655_s6, %s843_s7 }
 0x2e8   :  { %p661_p11 = pnand %p659_p10, %p656_p9 }
 0x2ea   :  { %664 = shalt.err (!%p661_p11)
}
 0x2eb   :  { %366 = dma.vmem_to_hbm [thread:$0]  %s361_s13, 64, %s843_s7, [#allocation4], %s677_s25, %s677_s25, %s678_s26  }
 0x2ec   :  { %671 = dma.done.wait [#allocation4], 128  }
 0x2ed   :  { %672 = vsyncadd [#allocation4], 4294967168 }
 0x2ee   :  { %370 = vsyncpa [#allocation3], 1 }
 0x2ef   :  { %371 = vsyncpa [#allocation6], 1 }
 0x2f0   :  { %372 = vsyncpa [#allocation9], 1 }
 0x2f1   :  { %373 = vsyncpa [#allocation4], 1 }

// kernel: tpu_custom_call.1
= control target key start
LH: loop header
LB: loop body
LE: loop exit
PB: predicated region body
PF: predicated region fallthrough
CT: control target
= control target key end

     0   :  { %12 = vsyncpa [#allocation3], 0  ;;  %s836_s0 = inlined_call_operand.hbm [shape: f32[4,16], index: 0, kind: input, shape index: {}]   ;;  %s837_s1 = inlined_call_operand.hbm [shape: f32[16,128], index: 1, kind: input, shape index: {}]   ;;  %s838_s2 = inlined_call_operand.vmem [shape: f32[1,128], index: 2, kind: input, shape index: {}]   ;;  %s839_s3 = inlined_call_operand.hbm [shape: f32[128,128], index: 3, kind: input, shape index: {}]   ;;  %s840_s4 = inlined_call_operand.vmem [shape: f32[1,128], index: 4, kind: input, shape index: {}]   ;;  %s841_s5 = inlined_call_operand.hbm [shape: f32[128,128], index: 5, kind: input, shape index: {}]   ;;  %s842_s6 = inlined_call_operand.vmem [shape: f32[1,128], index: 6, kind: input, shape index: {}]   ;;  %s843_s7 = inlined_call_operand.hbm [shape: f32[4,128], index: 7, kind: output, shape index: {}]  }
   0x1   :  { %13 = vsyncpa [#allocation6], 0 }
   0x2   :  { %14 = vsyncpa [#allocation9], 0 }
   0x3   :  { %15 = vsyncpa [#allocation4], 0 }
   0x4   :  { %20 = vsyncadd [#allocation3], 64  ;;  %s673_s24 = smov [#allocation5]   ;;  %s555_s28 = scalar_lea.hbm %s837_s1, 256 }
   0x5   :  { %s33_s25 = sshll.u32 %s673_s24, 4  ;;  %p556_p0 = scmp.ne.s32.totalorder %s837_s1, %s555_s28  ;;  %s34_s25 = int_to_ptr.vmem [resolvable:$true] %s33_s25 }
   0x6   :  { %p559_p1 = scmp.lt.u32.totalorder %s555_s28, %s837_s1 }
   0x8   :  { %p561_p2 = pnand %p559_p1, %p556_p0 }
   0xa   :  { %564 = shalt.err (!%p561_p2)
}
   0xb   :  { %s565_s10 = scalar_lea.vmem %s34_s25, 256  ;;  %p570_p4 = scmp.lt.s32.totalorder %s34_s25, %s34_s25 }
   0xc   :  { %p566_p3 = scmp.ne.s32.totalorder %s34_s25, %s565_s10  ;;  %p571_p5 = scmp.lt.s32.totalorder %s565_s10, %s565_s10 }
   0xe   :  { %p572_p6 = por %p571_p5, %p570_p4 }
  0x10   :  { %p573_p7 = pnand %p572_p6, %p566_p3 }
  0x12   :  { %576 = shalt.err (!%p573_p7)
}
  0x13   :  { %s674_s11 = smov 128   ;;  %s675_s12 = smov 8  }
  0x14   :  { %39 = dma.hbm_to_vmem [thread:$0]  %s837_s1, 256, %s34_s25, [#allocation6], %s674_s11, %s674_s11, %s675_s12  }
  0x15   :  { %s676_s15 = smov [#allocation2]   ;;  %s577_s19 = scalar_lea.hbm %s836_s0, 64 }
  0x16   :  { %s21_s16 = sshll.u32 %s676_s15, 4  ;;  %p578_p8 = scmp.ne.s32.totalorder %s836_s0, %s577_s19  ;;  %s22_s16 = int_to_ptr.vmem [resolvable:$true] %s21_s16 }
  0x17   :  { %p581_p9 = scmp.lt.u32.totalorder %s577_s19, %s836_s0 }
  0x19   :  { %p583_p10 = pnand %p581_p9, %p578_p8 }
  0x1b   :  { %586 = shalt.err (!%p583_p10)
}
  0x1c   :  { %s587_s24 = scalar_lea.vmem %s22_s16, 64  ;;  %s591_s1 = scalar_lea.vmem %s22_s16, 128 }
  0x1d   :  { %p588_p11 = scmp.ne.s32.totalorder %s22_s16, %s587_s24  ;;  %p592_p12 = scmp.lt.s32.totalorder %s22_s16, %s22_s16 }
  0x1e   :  { %p593_p13 = scmp.lt.s32.totalorder %s591_s1, %s587_s24 }
  0x20   :  { %p594_p0 = por %p593_p13, %p592_p12 }
  0x22   :  { %p595_p1 = pnand %p594_p0, %p588_p11 }
  0x24   :  { %598 = shalt.err (!%p595_p1)
}
  0x25   :  { %s677_s25 = smov 64   ;;  %s678_s26 = smov 4  }
  0x26   :  { %27 = dma.hbm_to_vmem [thread:$0]  %s836_s0, 64, %s22_s16, [#allocation3], %s677_s25, %s677_s25, %s678_s26  }
  0x27   :  { %s679_s29 = smov [#allocation7]   ;;  %s680_s8 = smov [#allocation8]  }
  0x28   :  { %s47_s30 = sshll.u32 %s679_s29, 4  ;;  %s61_s9 = sshll.u32 %s680_s8, 4  ;;  %s48_s30 = int_to_ptr.vmem [resolvable:$true] %s47_s30  ;;  %s755_s9 = int_to_ptr.vmem [resolvable:$true] %s61_s9 }
  0x29   :  { %s599_s14 = scalar_lea.hbm %s839_s3, 2048 }
  0x2a   :  { %p600_p2 = scmp.ne.s32.totalorder %s839_s3, %s599_s14  ;;  %p603_p3 = scmp.lt.u32.totalorder %s599_s14, %s839_s3 }
  0x2c   :  { %p605_p4 = pnand %p603_p3, %p600_p2 }
  0x2e   :  { %608 = shalt.err (!%p605_p4)
}
  0x2f   :  { %s609_s0 = scalar_lea.vmem %s48_s30, 2048  ;;  %p614_p6 = scmp.lt.s32.totalorder %s48_s30, %s48_s30 }
  0x30   :  { %p610_p5 = scmp.ne.s32.totalorder %s48_s30, %s609_s0  ;;  %p615_p7 = scmp.lt.s32.totalorder %s609_s0, %s609_s0 }
  0x32   :  { %p616_p8 = por %p615_p7, %p614_p6 }
  0x34   :  { %p617_p9 = pnand %p616_p8, %p610_p5 }
  0x36   :  { %620 = shalt.err (!%p617_p9)
}
  0x37   :  { %53 = dma.hbm_to_vmem [thread:$0]  %s839_s3, 2048, %s48_s30, [#allocation6], %s674_s11, %s674_s11, %s675_s12  }
  0x38   :  { %s621_s23 = scalar_lea.hbm %s841_s5, 2048 }
  0x39   :  { %p622_p10 = scmp.ne.s32.totalorder %s841_s5, %s621_s23  ;;  %p625_p11 = scmp.lt.u32.totalorder %s621_s23, %s841_s5 }
  0x3b   :  { %p627_p12 = pnand %p625_p11, %p622_p10 }
  0x3d   :  { %630 = shalt.err (!%p627_p12)
}
  0x3e   :  { %s631_s29 = scalar_lea.vmem %s755_s9, 2048  ;;  %p636_p0 = scmp.lt.s32.totalorder %s755_s9, %s755_s9 }
  0x3f   :  { %p632_p13 = scmp.ne.s32.totalorder %s755_s9, %s631_s29  ;;  %p637_p1 = scmp.lt.s32.totalorder %s631_s29, %s631_s29 }
  0x41   :  { %p638_p2 = por %p637_p1, %p636_p0 }
  0x43   :  { %p639_p3 = pnand %p638_p2, %p632_p13 }
  0x45   :  { %642 = shalt.err (!%p639_p3)
}
  0x46   :  { %67 = dma.hbm_to_vmem [thread:$0]  %s841_s5, 2048, %s755_s9, [#allocation9], %s674_s11, %s674_s11, %s675_s12  }
  0x47   :  { %665 = dma.done.wait [#allocation3], 128  }
  0x48   :  { %666 = vsyncadd [#allocation3], 4294967168 }
  0x49   :  { %667 = dma.done.wait [#allocation6], 2304  }
  0x4a   :  { %668 = vsyncadd [#allocation6], 4294964992 }
  0x4b   :  { %669 = dma.done.wait [#allocation9], 2048  }
  0x4c   :  { %670 = vsyncadd [#allocation9], 4294965248  ;;  %v681_v0 = vmov 0.0|0.0   ;;  %vm682_vm0 = vmmov 0   ;;  %v683_v1 = vmov 0.0   ;;  %v83_v2 = vld [vmem:[#allocation5] sm:$0xff] }
  0x4d   :  { %492 = vmatprep.subr.bf16.mxu0 %v681_v0  ;;  %419 = vmatprep.mubr.msk.f32.mxu0 %vm682_vm0, %v683_v1  ;;  %v84_v3 = vld [vmem:[#allocation5 + $0x8] sm:$0xff]  ;;  %v167_v5 = vld [vmem:[#allocation7] sm:$0xff]  ;;  %v168_v6 = vld [vmem:[#allocation7 + $0x8] sm:$0xff]  ;;  %vm92_vm1 = vcmask 130048  }
  0x4e   :  { %495 = vmatprep.subr.bf16.mxu1 %v681_v0  ;;  %454 = vmatprep.mubr.msk.f32.mxu1 %vm682_vm0, %v683_v1  ;;  %v493_v4 = vpack.c.bf16 %v84_v3, %v83_v2  ;;  %v169_v7 = vld [vmem:[#allocation7 + $0x10] sm:$0xff]  ;;  %v496_v8 = vpack.c.bf16 %v168_v6, %v167_v5  ;;  %v170_v9 = vld [vmem:[#allocation7 + $0x18] sm:$0xff]  ;;  %v82_v10 = vld [vmem:[#allocation2] sm:$0xff] }
  0x4f   :  { %v499_v11 = vpack.c.bf16 %v170_v9, %v169_v7  ;;  %v171_v12 = vld [vmem:[#allocation7 + $0x20] sm:$0xff]  ;;  %v172_v13 = vld [vmem:[#allocation7 + $0x28] sm:$0xff]  ;;  %v173_v15 = vld [vmem:[#allocation7 + $0x30] sm:$0xff] }
  0x50   :  { %494 = vmatpush3.bf16.msra.mxu0 %v493_v4  ;;  %497 = vmatpush3.bf16.msra.mxu1 %v496_v8  ;;  %v502_v14 = vpack.c.bf16 %v172_v13, %v171_v12  ;;  %v174_v16 = vld [vmem:[#allocation7 + $0x38] sm:$0xff]  ;;  %v175_v18 = vld [vmem:[#allocation7 + $0x40] sm:$0xff]  ;;  %v176_v19 = vld [vmem:[#allocation7 + $0x48] sm:$0xff] }
  0x51   :  { %519 = vmatprep.subr.bf16.mxu0 %v681_v0  ;;  %498 = vmatprep.subr.bf16.mxu1 %v681_v0  ;;  %v505_v17 = vpack.c.bf16 %v174_v16, %v173_v15  ;;  %v508_v20 = vpack.c.bf16 %v176_v19, %v175_v18  ;;  %v177_v21 = vld [vmem:[#allocation7 + $0x50] sm:$0xff]  ;;  %v178_v22 = vld [vmem:[#allocation7 + $0x58] sm:$0xff]  ;;  %v179_v24 = vld [vmem:[#allocation7 + $0x60] sm:$0xff] }
  0x52   :  { %v511_v23 = vpack.c.bf16 %v178_v22, %v177_v21  ;;  %v180_v25 = vld [vmem:[#allocation7 + $0x68] sm:$0xff]  ;;  %v181_v27 = vld [vmem:[#allocation7 + $0x70] sm:$0xff]  ;;  %v182_v28 = vld [vmem:[#allocation7 + $0x78] sm:$0xff] }
  0x53   :  { %420 = vmatmul.mubr.msk.f32.vlgmr.msra.gmra.mrb[0].mxu0 %vm92_vm1, %v82_v10  ;;  %v514_v26 = vpack.c.bf16 %v180_v25, %v179_v24  ;;  %v517_v29 = vpack.c.bf16 %v182_v28, %v181_v27  ;;  %v261_v30 = vld [vmem:[#allocation8] sm:$0xff]  ;;  %v262_v31 = vld [vmem:[#allocation8 + $0x8] sm:$0xff]  ;;  %v263_v32 = vld [vmem:[#allocation8 + $0x10] sm:$0xff] }
  0x54   :  { %489 = vmatprep.mubr.msk.f32.mxu0 %vm682_vm0, %v683_v1  ;;  %500 = vmatpush3.bf16.msra.mxu1 %v499_v11  ;;  %v520_v33 = vpack.c.bf16 %v262_v31, %v261_v30  ;;  %v264_v34 = vld [vmem:[#allocation8 + $0x18] sm:$0xff]  ;;  %v265_v36 = vld [vmem:[#allocation8 + $0x20] sm:$0xff]  ;;  %v266_v37 = vld [vmem:[#allocation8 + $0x28] sm:$0xff] }
  0x55   :  { %501 = vmatprep.subr.bf16.mxu1 %v681_v0  ;;  %v523_v35 = vpack.c.bf16 %v264_v34, %v263_v32  ;;  %v526_v38 = vpack.c.bf16 %v266_v37, %v265_v36  ;;  %v267_v39 = vld [vmem:[#allocation8 + $0x30] sm:$0xff]  ;;  %v268_v40 = vld [vmem:[#allocation8 + $0x38] sm:$0xff]  ;;  %v269_v42 = vld [vmem:[#allocation8 + $0x40] sm:$0xff] }
  0x56   :  { %521 = vmatpush3.bf16.msra.mxu0 %v520_v33  ;;  %v529_v41 = vpack.c.bf16 %v268_v40, %v267_v39  ;;  %v270_v43 = vld [vmem:[#allocation8 + $0x48] sm:$0xff]  ;;  %v271_v45 = vld [vmem:[#allocation8 + $0x50] sm:$0xff]  ;;  %v272_v46 = vld [vmem:[#allocation8 + $0x58] sm:$0xff] }
  0x57   :  { %522 = vmatprep.subr.bf16.mxu0 %v681_v0  ;;  %v532_v44 = vpack.c.bf16 %v270_v43, %v269_v42  ;;  %v535_v47 = vpack.c.bf16 %v272_v46, %v271_v45  ;;  %v273_v48 = vld [vmem:[#allocation8 + $0x60] sm:$0xff]  ;;  %v274_v49 = vld [vmem:[#allocation8 + $0x68] sm:$0xff]  ;;  %v275_v56 = vld [vmem:[#allocation8 + $0x70] sm:$0xff] }
  0x58   :  { %503 = vmatpush3.bf16.msra.mxu1 %v502_v14  ;;  %v538_v50 = vpack.c.bf16 %v274_v49, %v273_v48  ;;  %v374_v51 = vld [vmem:[%s838_s2] ss:$0 sm:$0xff]  ;;  %v276_v57 = vld [vmem:[#allocation8 + $0x78] sm:$0xff] }
  0x59   :  { %504 = vmatprep.subr.bf16.mxu1 %v681_v0  ;;  %v541_v58 = vpack.c.bf16 %v276_v57, %v275_v56  ;;  %v376_v59 = vld [vmem:[%s840_s4] ss:$0 sm:$0xff] }
  0x5a   :  { %524 = vmatpush3.bf16.msra.mxu0 %v523_v35 }
  0x5b   :  { %525 = vmatprep.subr.bf16.mxu0 %v681_v0 }
  0x5c   :  { %506 = vmatpush3.bf16.msra.mxu1 %v505_v17 }
  0x5d   :  { %507 = vmatprep.subr.bf16.mxu1 %v681_v0 }
  0x5e   :  { %527 = vmatpush3.bf16.msra.mxu0 %v526_v38 }
  0x5f   :  { %528 = vmatprep.subr.bf16.mxu0 %v681_v0 }
  0x60   :  { %509 = vmatpush3.bf16.msra.mxu1 %v508_v20 }
  0x61   :  { %510 = vmatprep.subr.bf16.mxu1 %v681_v0 }
  0x62   :  { %530 = vmatpush3.bf16.msra.mxu0 %v529_v41 }
  0x63   :  { %531 = vmatprep.subr.bf16.mxu0 %v681_v0 }
  0x64   :  { %512 = vmatpush3.bf16.msra.mxu1 %v511_v23 }
  0x65   :  { %513 = vmatprep.subr.bf16.mxu1 %v681_v0 }
  0x66   :  { %533 = vmatpush3.bf16.msra.mxu0 %v532_v44 }
  0x67   :  { %534 = vmatprep.subr.bf16.mxu0 %v681_v0 }
  0x68   :  { %515 = vmatpush3.bf16.msra.mxu1 %v514_v26 }
  0x69   :  { %516 = vmatprep.subr.bf16.mxu1 %v681_v0 }
  0x6a   :  { %536 = vmatpush3.bf16.msra.mxu0 %v535_v47 }
  0x6b   :  { %537 = vmatprep.subr.bf16.mxu0 %v681_v0 }
  0x6c   :  { %518 = vmatpush3.bf16.msra.mxu1 %v517_v29 }
  0x6e   :  { %539 = vmatpush3.bf16.msra.mxu0 %v538_v50 }
  0x6f   :  { %540 = vmatprep.subr.bf16.mxu0 %v681_v0  ;;  %v377_v0 = vld [vmem:[%s842_s6] ss:$0 sm:$0xff] }
  0x72   :  { %542 = vmatpush3.bf16.msra.mxu0 %v541_v58 }
 0x126   :  { %v162_v52 = vpop.f32.mrb[0].mxu0 }
 0x127   :  { %v163_v53 = vadd.f32 %v374_v51, %v162_v52  ;;  %v421_v54 = vpop.f32.mrb[1].mxu0 }
 0x129   :  { %v166_v55 = vmax.f32 %v163_v53, 0.0 }
 0x12b   :  { %455 = vmatmul.mubr.f32.vlgmr.msra.gmra.mrb[0].mxu1 %v166_v55 }
 0x1fe   :  { %v256_v60 = vpop.f32.mrb[0].mxu1 }
 0x1ff   :  { %v257_v61 = vadd.f32 %v376_v59, %v256_v60  ;;  %v456_v62 = vpop.f32.mrb[1].mxu1 }
 0x201   :  { %v260_v63 = vmax.f32 %v257_v61, 0.0 }
 0x203   :  { %490 = vmatmul.mubr.f32.vlgmr.msra.gmra.mrb[2].mxu0 %v260_v63 }
 0x2d6   :  { %v350_v1 = vpop.f32.mrb[2].mxu0 }
 0x2d7   :  { %v351_v2 = vadd.f32 %v377_v0, %v350_v1  ;;  %v491_v3 = vpop.f32.mrb[3].mxu0 }
 0x2d9   :  { %354 = vst [vmem:[#allocation10] sm:$0xff] %v351_v2 }
 0x2da   :  { %359 = vsyncadd [#allocation4], 64  ;;  %s684_s10 = smov [#allocation10]  }
 0x2db   :  { %s360_s13 = sshll.u32 %s684_s10, 4  ;;  %s361_s13 = int_to_ptr.vmem [resolvable:$true] %s360_s13 }
 0x2dc   :  { %s643_s14 = scalar_lea.vmem %s361_s13, 64  ;;  %s647_s4 = scalar_lea.vmem %s361_s13, 128 }
 0x2dd   :  { %p644_p4 = scmp.ne.s32.totalorder %s361_s13, %s643_s14  ;;  %p648_p5 = scmp.lt.s32.totalorder %s361_s13, %s361_s13 }
 0x2de   :  { %p649_p6 = scmp.lt.s32.totalorder %s647_s4, %s643_s14 }
 0x2e0   :  { %p650_p7 = por %p649_p6, %p648_p5 }
 0x2e2   :  { %p651_p8 = pnand %p650_p7, %p644_p4 }
 0x2e4   :  { %654 = shalt.err (!%p651_p8)
}
 0x2e5   :  { %s655_s6 = scalar_lea.hbm %s843_s7, 64 }
 0x2e6   :  { %p656_p9 = scmp.ne.s32.totalorder %s843_s7, %s655_s6  ;;  %p659_p10 = scmp.lt.u32.totalorder %s655_s6, %s843_s7 }
 0x2e8   :  { %p661_p11 = pnand %p659_p10, %p656_p9 }
 0x2ea   :  { %664 = shalt.err (!%p661_p11)
}
 0x2eb   :  { %366 = dma.vmem_to_hbm [thread:$0]  %s361_s13, 64, %s843_s7, [#allocation4], %s677_s25, %s677_s25, %s678_s26  }
 0x2ec   :  { %671 = dma.done.wait [#allocation4], 128  }
 0x2ed   :  { %672 = vsyncadd [#allocation4], 4294967168 }
 0x2ee   :  { %370 = vsyncpa [#allocation3], 1 }
 0x2ef   :  { %371 = vsyncpa [#allocation6], 1 }
 0x2f0   :  { %372 = vsyncpa [#allocation9], 1 }
 0x2f1   :  { %373 = vsyncpa [#allocation4], 1 }

</bundles_post_ra>
